<compile_context>
chip_gen: v7x
topology: tpu7x:2x2x1
jax: 0.10.0
libtpu: 0.0.40
codegen_flags: <defaults>
</compile_context>

<pallas_src>
from collections import OrderedDict
from functools import partial

import jax
import jax.numpy as jnp
from jax.experimental import pallas as pl
from jax.experimental.pallas import tpu as pltpu


def _round_up(x, m):
    return (x + m - 1) // m * m


def _vmem_budget_bytes():
    """Generation-aware VMEM budget (~3/4 of physical), v7x-safe fallback."""
    try:
        cap = int(getattr(pltpu.get_tpu_info(), "vmem_capacity_bytes"))
        return max(min(cap * 3 // 4, 96 << 20), 32 << 20)
    except Exception:
        return 48 << 20  # safe for v7x's 64 MiB VMEM


# --------------------------------------------------------------------------- #
# Kernel: strided-conv as im2col GEMM (+ bias + ReLU), bf16 in, f32 accumulate #
# --------------------------------------------------------------------------- #
def _conv_gemm_kernel(p_ref, w_ref, b_ref, o_ref):
    # p_ref: (tm, Kp) bf16 patches; w_ref: (Kp, tn) bf16; b_ref: (1, tn) f32.
    acc = jnp.dot(p_ref[...], w_ref[...], preferred_element_type=jnp.float32)
    acc = acc + b_ref[...]
    o_ref[...] = jnp.maximum(acc, 0.0).astype(o_ref.dtype)


def _select_tiles(Kp, Cout, out_bytes, budget):
    """Pick (tm, tn): weight fully VMEM-resident (tn == Cout) whenever it fits.

    VMEM estimate assumes double-buffered blocks: 2*(patch + weight + bias + out).
    """
    def est(tm, tn):
        return 2 * (tm * Kp * 2 + Kp * tn * 2 + tn * 4 + tm * tn * out_bytes)

    # Preferred: weight resident; big row tiles for small-K layers.
    for tm in (2048, 1024, 512, 256, 128, 64, 32, 16, 8):
        if est(tm, Cout) <= budget:
            return tm, Cout
    # Fallback (weight too big to hold): tile N too; M stays the outer axis.
    for tn in (1024, 512, 256, 128):
        if Cout % tn:
            continue
        for tm in (1024, 512, 256, 128, 64, 32, 16, 8):
            if est(tm, tn) <= budget:
                return tm, tn
    return 8, Cout if Cout <= 128 else 128


@partial(jax.jit, static_argnums=(3, 4, 5),
         static_argnames=("out_dtype", "channels_last"))
def _patchify_conv(x, w2, b2, stride, Kp, Cout, *, out_dtype, channels_last):
    """Conv with kernel==stride (non-overlapping patches) + bias + ReLU.

    x:  (B, Cin, H, W)  NCHW, any float dtype
    w2: (Kp, Cout) bf16  -- pre-padded / transposed conv weight
    b2: (1, Cout)  f32
    Returns (B, Ho, Wo, Cout) `out_dtype` if channels_last, else NCHW.
    """
    B, Cin, H, W = x.shape
    k = stride
    # TODO(synk): pad ragged H/W (real DETR variable-size batches) instead of asserting.
    assert H % k == 0 and W % k == 0
    Ho, Wo = H // k, W // k
    M = B * Ho * Wo
    K = Cin * k * k

    # im2col in bf16 (cast BEFORE the transpose halves the wrapper HBM traffic).
    # Patch-row layout (Cin, kh, kw) matches the precomputed weight layout.
    # TODO(synk): fold patch assembly into the pallas_call (in-kernel im2col)
    # to remove this HBM round trip of the input entirely.
    xb = x.astype(jnp.bfloat16)
    xp = xb.reshape(B, Cin, Ho, k, Wo, k).transpose(0, 2, 4, 1, 3, 5)
    patches = xp.reshape(M, K)

    out_bytes = jnp.dtype(out_dtype).itemsize
    budget = _vmem_budget_bytes()
    tm, tn = _select_tiles(Kp, Cout, out_bytes, budget)
    if tm > M:
        tm = _round_up(M, 8)
    Mp = _round_up(M, tm)

    patches = jnp.pad(patches, ((0, Mp - M), (0, Kp - K)))

    def _est(tm_, tn_):
        return 2 * (tm_ * Kp * 2 + Kp * tn_ * 2 + tn_ * 4 + tm_ * tn_ * out_bytes)

    vmem_limit = int(min(budget, max(_est(tm, tn) + (8 << 20), 16 << 20)))

    # Accurate advisory traffic: weights read once if resident, else per M tile.
    n_weight_reads = 1 if tn == Cout else max(Mp // tm, 1)
    cost = pl.CostEstimate(
        flops=2 * Mp * Kp * Cout,
        transcendentals=0,
        bytes_accessed=int(Mp * Kp * 2
                           + Kp * Cout * 2 * n_weight_reads
                           + Cout * 4
                           + Mp * Cout * out_bytes),
    )

    if tn == Cout:
        # Weight + bias fully VMEM-resident; 1-D grid over row tiles only.
        grid = (Mp // tm,)
        in_specs = [
            pl.BlockSpec((tm, Kp), lambda i: (i, 0)),
            pl.BlockSpec((Kp, Cout), lambda i: (0, 0)),   # resident
            pl.BlockSpec((1, Cout), lambda i: (0, 0)),    # resident
        ]
        out_specs = pl.BlockSpec((tm, Cout), lambda i: (i, 0))
        dims = ("parallel",)          # v7x: 2 TCs split M; free on v5e/v6e
    else:
        # Fallback: N tiled. M outer/"parallel", N inner/"arbitrary" so the
        # patch tile stays resident across the N sweep and v7x's two
        # TensorCores split M (never N).
        grid = (Mp // tm, Cout // tn)
        in_specs = [
            pl.BlockSpec((tm, Kp), lambda i, j: (i, 0)),
            pl.BlockSpec((Kp, tn), lambda i, j: (0, j)),
            pl.BlockSpec((1, tn), lambda i, j: (0, j)),
        ]
        out_specs = pl.BlockSpec((tm, tn), lambda i, j: (i, j))
        dims = ("parallel", "arbitrary")

    out = pl.pallas_call(
        _conv_gemm_kernel,
        out_shape=jax.ShapeDtypeStruct((Mp, Cout), out_dtype),
        grid_spec=pltpu.PrefetchScalarGridSpec(
            num_scalar_prefetch=0,
            grid=grid,
            in_specs=in_specs,
            out_specs=out_specs,
        ),
        compiler_params=pltpu.CompilerParams(
            dimension_semantics=dims,
            vmem_limit_bytes=vmem_limit,
        ),
        cost_estimate=cost,
    )(patches, w2, b2)

    out = out[:M].reshape(B, Ho, Wo, Cout)
    if channels_last:
        return out                                   # (B, Ho, Wo, Cout)
    # PyTorch-parity NCHW (extra HBM round trip; opt-in, do once per model).
    return out.transpose(0, 3, 1, 2)


# --------------------------------------------------------------------------- #
# Mask nearest-neighbour resize (exact F.interpolate default-mode indices)     #
# --------------------------------------------------------------------------- #
def _interpolate_mask_nearest(mask_bool, out_hw):
    """Equivalent of F.interpolate(m[None].float(), size=out_hw).to(bool)[0].

    Pure gather glue: nearest source index is floor(out_idx * in / out).
    """
    B, H, W = mask_bool.shape
    Ho, Wo = out_hw
    ri = (jnp.arange(Ho) * H) // Ho
    ci = (jnp.arange(Wo) * W) // Wo
    return mask_bool[:, ri[:, None], ci[None, :]]


# --------------------------------------------------------------------------- #
# BackboneBase equivalent                                                      #
# --------------------------------------------------------------------------- #
class BackboneBase:
    def __init__(self, key, in_channels: int, return_interm_layers: bool, *,
                 channels_last: bool = True, out_dtype=jnp.bfloat16):
        if return_interm_layers:
            self.return_names = ["0", "1", "2"]      # layer2, layer3, layer4
            self.strides = [8, 16, 32]
            self.num_channels = [512, 1024, 2048]
        else:
            self.return_names = ["0"]                # layer4
            self.strides = [32]
            self.num_channels = [2048]
        self.channels_last = channels_last
        self.out_dtype = out_dtype

        # Deterministic synthetic backbone parameters.  Per perf review the
        # padded/transposed bf16 (Kp, Cout) weight and f32 bias row are
        # precomputed once here (kernel-ready layout, no per-call cast/pad).
        self.params = []
        for s, c in zip(self.strides, self.num_channels):
            key, k1 = jax.random.split(key)
            K = in_channels * s * s
            Kp = _round_up(K, 128)
            w = jax.random.normal(k1, (c, in_channels, s, s), jnp.float32)
            w = w * (1.0 / jnp.sqrt(jnp.float32(K)))
            b = jnp.zeros((c,), jnp.float32)
            w2 = jnp.pad(w.reshape(c, K).T, ((0, Kp - K), (0, 0)))
            w2 = w2.astype(jnp.bfloat16)             # (Kp, Cout), stored bf16
            b2 = b.reshape(1, c).astype(jnp.float32)
            self.params.append((w, b, w2, b2, Kp))

    def forward(self, tensors, mask):
        """tensors: (B, Cin, H, W) float32; mask: (B, H, W) bool (True = pad).

        Returns OrderedDict[name] = (features, mask) — the NestedTensor pair
        per returned layer.  Features are channels-last bf16 by default
        (NCHW float32 available via channels_last=False / out_dtype=float32).
        """
        assert mask is not None
        out = OrderedDict()
        for name, stride, c, (w, b, w2, b2, Kp) in zip(
                self.return_names, self.strides, self.num_channels, self.params):
            x = _patchify_conv(tensors, w2, b2, stride, Kp, c,
                               out_dtype=self.out_dtype,
                               channels_last=self.channels_last)
            hw = x.shape[1:3] if self.channels_last else x.shape[-2:]
            m = _interpolate_mask_nearest(mask, hw)
            out[name] = (x, m)
        return out


# --------------------------------------------------------------------------- #
# Demo                                                                         #
# --------------------------------------------------------------------------- #
if __name__ == "__main__":
    key = jax.random.PRNGKey(0)
    B, Cin, H, W = 2, 3, 64, 64
    kx, kp = jax.random.split(key)

    x = jax.random.normal(kx, (B, Cin, H, W), jnp.float32)

    # DETR-style padding mask: True where padded.
    col = jnp.arange(W)[None, None, :]
    row = jnp.arange(H)[None, :, None]
    valid_w = jnp.array([W, W // 2])[:, None, None]
    valid_h = jnp.array([H, 3 * H // 4])[:, None, None]
    mask = (col >= valid_w) | (row >= valid_h)                   # (B, H, W) bool

    # Optimized path (default): channels-last bf16 features.
    model = BackboneBase(kp, in_channels=Cin, return_interm_layers=True)
    out = model.forward(x, mask)
    for name, (feat, m) in out.items():
        jax.block_until_ready(feat)
        jax.block_until_ready(m)

    assert out["0"][0].shape == (B, H // 8, W // 8, 512)
    assert out["1"][0].shape == (B, H // 16, W // 16, 1024)
    assert out["2"][0].shape == (B, H // 32, W // 32, 2048)
    assert out["0"][0].dtype == jnp.bfloat16
    assert out["0"][1].shape == (B, H // 8, W // 8)
    assert out["2"][1].shape == (B, H // 32, W // 32)
    assert out["2"][1].dtype == jnp.bool_

    # Numerical check vs a reference f32 strided conv (bf16 operand rounding,
    # f32 accumulation — documented precision trade).
    for name, stride, (w, b, *_rest) in zip(model.return_names, model.strides,
                                            model.params):
        ref = jax.lax.conv_general_dilated(
            x, w, window_strides=(stride, stride), padding="VALID",
            dimension_numbers=("NCHW", "OIHW", "NCHW"))
        ref = jnp.maximum(ref + b[None, :, None, None], 0.0)
        ref = ref.transpose(0, 2, 3, 1)                          # NHWC
        got = out[name][0].astype(jnp.float32)
        err = float(jnp.max(jnp.abs(got - ref)))
        scale = float(jnp.max(jnp.abs(ref))) + 1e-6
        assert err / scale < 3e-2, (name, err, scale)

    # PyTorch-parity mode (NCHW float32) still works; exercised once.
    parity = BackboneBase(kp, in_channels=Cin, return_interm_layers=False,
                          channels_last=False, out_dtype=jnp.float32)
    pout = parity.forward(x, mask)
    jax.block_until_ready(pout["0"][0])
    assert pout["0"][0].shape == (B, 2048, H // 32, W // 32)
    assert pout["0"][0].dtype == jnp.float32
    assert pout["0"][1].shape == (B, H // 32, W // 32)

    print("KERNEL_OK")
</pallas_src>

<mosaic_0001>
module attributes {stable_mosaic.version = 11 : i64} {
  func.func @_conv_gemm_kernel(%arg0: i32, %arg1: memref<128x256xbf16, #tpu.memory_space<vmem>>, %arg2: memref<256x512xbf16, #tpu.memory_space<vmem>>, %arg3: memref<1x512xf32, #tpu.memory_space<vmem>>, %arg4: memref<128x512xbf16, #tpu.memory_space<vmem>>) attributes {dimension_semantics = [#tpu.dimension_semantics<parallel>], iteration_bounds = array<i64: 1>, scalar_prefetch = 0 : i64, scratch_operands = 0 : i64, tpu.core_type = #tpu.core_type<tc>, window_params = [{transform_indices = @transform_0, window_bounds = array<i64: 128, 256>}, {pipeline_mode = #tpu.pipeline_mode<synchronous>, transform_indices = @transform_1, window_bounds = array<i64: 256, 512>}, {pipeline_mode = #tpu.pipeline_mode<synchronous>, transform_indices = @transform_2, window_bounds = array<i64: 1, 512>}, {transform_indices = @transform_3, window_bounds = array<i64: 128, 512>}]} {
    %c0 = arith.constant 0 : index
    %c0_0 = arith.constant 0 : index
    %0 = vector.load %arg1[%c0, %c0_0] : memref<128x256xbf16, #tpu.memory_space<vmem>>, vector<128x256xbf16>
    %c0_1 = arith.constant 0 : index
    %c0_2 = arith.constant 0 : index
    %1 = vector.load %arg2[%c0_1, %c0_2] : memref<256x512xbf16, #tpu.memory_space<vmem>>, vector<256x512xbf16>
    %cst = arith.constant dense<0.000000e+00> : vector<128x512xf32>
    %2 = tpu.matmul %0, %1, %cst {dimension_numbers = #tpu.dot_dimension_numbers<[1], [0], [0], [1], [0, 0, 1, 1], [], []>} : vector<128x256xbf16>, vector<256x512xbf16>, vector<128x512xf32> -> vector<128x512xf32>
    %c0_3 = arith.constant 0 : index
    %c0_4 = arith.constant 0 : index
    %3 = vector.load %arg3[%c0_3, %c0_4] : memref<1x512xf32, #tpu.memory_space<vmem>>, vector<1x512xf32>
    %4 = vector.broadcast %3 : vector<1x512xf32> to vector<128x512xf32>
    %5 = arith.addf %2, %4 : vector<128x512xf32>
    %cst_5 = arith.constant 0.000000e+00 : f32
    %6 = vector.broadcast %cst_5 : f32 to vector<128x512xf32>
    %7 = arith.maximumf %5, %6 : vector<128x512xf32>
    %8 = arith.truncf %7 : vector<128x512xf32> to vector<128x512xbf16>
    %c0_6 = arith.constant 0 : index
    %c0_7 = arith.constant 0 : index
    %9 = vector.load %arg4[%c0_6, %c0_7] : memref<128x512xbf16, #tpu.memory_space<vmem>>, vector<128x512xbf16>
    tpu.vector_store %arg4[%c0_6, %c0_7], %8 {strides = array<i32>} : memref<128x512xbf16, #tpu.memory_space<vmem>>, vector<128x512xbf16>,
    return
  }
  func.func @transform_0(%arg0: i32) -> (i32, i32) {
    %c0_i32 = arith.constant 0 : i32
    %c0_i32_0 = arith.constant 0 : i32
    return %arg0, %c0_i32 : i32, i32
  }
  func.func @transform_1(%arg0: i32) -> (i32, i32) {
    %c0_i32 = arith.constant 0 : i32
    %c0_i32_0 = arith.constant 0 : i32
    %c0_i32_1 = arith.constant 0 : i32
    return %c0_i32, %c0_i32_0 : i32, i32
  }
  func.func @transform_2(%arg0: i32) -> (i32, i32) {
    %c0_i32 = arith.constant 0 : i32
    %c0_i32_0 = arith.constant 0 : i32
    %c0_i32_1 = arith.constant 0 : i32
    return %c0_i32, %c0_i32_0 : i32, i32
  }
  func.func @transform_3(%arg0: i32) -> (i32, i32) {
    %c0_i32 = arith.constant 0 : i32
    %c0_i32_0 = arith.constant 0 : i32
    return %arg0, %c0_i32 : i32, i32
  }
}

</mosaic_0001>

<bundles_post_ra>
// kernel: _patchify_conv.1
= control target key start
LH: loop header
LB: loop body
LE: loop exit
PB: predicated region body
PF: predicated region fallthrough
CT: control target
= control target key end

     0   :  { %s1688_s0 = inlined_call_operand.vmem [shape: bf16[128,256], index: 0, kind: input, shape index: {}]   ;;  %s1689_s1 = inlined_call_operand.vmem [shape: bf16[256,512], index: 1, kind: input, shape index: {}]   ;;  %s1690_s2 = inlined_call_operand.vmem [shape: f32[1,512], index: 2, kind: input, shape index: {}]   ;;  %s1691_s3 = inlined_call_operand.hbm [shape: bf16[128,512], index: 3, kind: output, shape index: {}]  }
   0x1   :  { %v1194_v0 = vld [vmem:[%s1689_s1 + $0x4] ss:$16 sps:$4 sm:$0xff]   ;;  %v1196_v1 = vld [vmem:[%s1689_s1 + $0xc] ss:$16 sps:$4 sm:$0xff]   ;;  %v1198_v2 = vld [vmem:[%s1689_s1] ss:$16 sps:$4 sm:$0xff]  }
   0x2   :  { %517 = vmatprep.subr.bf16.mxu0 %v1194_v0  ;;  %v1199_v3 = vld [vmem:[%s1689_s1 + $0x8] ss:$16 sps:$4 sm:$0xff]   ;;  %630 = vmatprep.subr.bf16.mxu1 %v1196_v1  ;;  %v1200_v4 = vld [vmem:[%s1689_s1 + $0x24] ss:$16 sps:$4 sm:$0xff]   ;;  %v1202_v5 = vld [vmem:[%s1689_s1 + $0x2c] ss:$16 sps:$4 sm:$0xff]  }
   0x3   :  { %518 = vmatpush1.bf16.msra.mxu0 %v1198_v2  ;;  %631 = vmatpush1.bf16.msra.mxu1 %v1199_v3  ;;  %v1204_v6 = vld [vmem:[%s1689_s1 + $0x20] ss:$16 sps:$4 sm:$0xff]   ;;  %v1205_v7 = vld [vmem:[%s1689_s1 + $0x28] ss:$16 sps:$4 sm:$0xff]   ;;  %v1206_v8 = vld [vmem:[%s1689_s1 + $0x44] ss:$16 sps:$4 sm:$0xff]  }
   0x4   :  { %519 = vmatprep.subr.bf16.mxu0 %v1200_v4  ;;  %632 = vmatprep.subr.bf16.mxu1 %v1202_v5  ;;  %v1208_v9 = vld [vmem:[%s1689_s1 + $0x4c] ss:$16 sps:$4 sm:$0xff]   ;;  %v1210_v10 = vld [vmem:[%s1689_s1 + $0x40] ss:$16 sps:$4 sm:$0xff]   ;;  %v1211_v11 = vld [vmem:[%s1689_s1 + $0x48] ss:$16 sps:$4 sm:$0xff]  }
   0x5   :  { %v1212_v12 = vld [vmem:[%s1689_s1 + $0x64] ss:$16 sps:$4 sm:$0xff]   ;;  %v1214_v13 = vld [vmem:[%s1689_s1 + $0x6c] ss:$16 sps:$4 sm:$0xff]   ;;  %v1216_v14 = vld [vmem:[%s1689_s1 + $0x60] ss:$16 sps:$4 sm:$0xff]  }
   0x6   :  { %v1217_v15 = vld [vmem:[%s1689_s1 + $0x68] ss:$16 sps:$4 sm:$0xff]   ;;  %v1218_v16 = vld [vmem:[%s1689_s1 + $0x84] ss:$16 sps:$4 sm:$0xff]   ;;  %v1220_v17 = vld [vmem:[%s1689_s1 + $0x8c] ss:$16 sps:$4 sm:$0xff]  }
   0x7   :  { %520 = vmatpush1.bf16.msra.mxu0 %v1204_v6  ;;  %633 = vmatpush1.bf16.msra.mxu1 %v1205_v7  ;;  %v1222_v18 = vld [vmem:[%s1689_s1 + $0x80] ss:$16 sps:$4 sm:$0xff]   ;;  %v1223_v19 = vld [vmem:[%s1689_s1 + $0x88] ss:$16 sps:$4 sm:$0xff]   ;;  %v1224_v20 = vld [vmem:[%s1689_s1 + $0xa4] ss:$16 sps:$4 sm:$0xff]  }
   0x8   :  { %521 = vmatprep.subr.bf16.mxu0 %v1206_v8  ;;  %634 = vmatprep.subr.bf16.mxu1 %v1208_v9  ;;  %v1226_v21 = vld [vmem:[%s1689_s1 + $0xac] ss:$16 sps:$4 sm:$0xff]   ;;  %v1228_v22 = vld [vmem:[%s1689_s1 + $0xa0] ss:$16 sps:$4 sm:$0xff]   ;;  %v1229_v23 = vld [vmem:[%s1689_s1 + $0xa8] ss:$16 sps:$4 sm:$0xff]  }
   0x9   :  { %v1230_v24 = vld [vmem:[%s1689_s1 + $0xc4] ss:$16 sps:$4 sm:$0xff]   ;;  %v1232_v25 = vld [vmem:[%s1689_s1 + $0xcc] ss:$16 sps:$4 sm:$0xff]   ;;  %v1234_v26 = vld [vmem:[%s1689_s1 + $0xc0] ss:$16 sps:$4 sm:$0xff]  }
   0xa   :  { %v1235_v27 = vld [vmem:[%s1689_s1 + $0xc8] ss:$16 sps:$4 sm:$0xff]   ;;  %v1236_v28 = vld [vmem:[%s1689_s1 + $0xe4] ss:$16 sps:$4 sm:$0xff]   ;;  %v1238_v29 = vld [vmem:[%s1689_s1 + $0xec] ss:$16 sps:$4 sm:$0xff]  }
   0xb   :  { %522 = vmatpush1.bf16.msra.mxu0 %v1210_v10  ;;  %635 = vmatpush1.bf16.msra.mxu1 %v1211_v11  ;;  %v1240_v30 = vld [vmem:[%s1689_s1 + $0xe0] ss:$16 sps:$4 sm:$0xff]   ;;  %v1241_v31 = vld [vmem:[%s1689_s1 + $0xe8] ss:$16 sps:$4 sm:$0xff]   ;;  %v1242_v32 = vld [vmem:[%s1689_s1 + $0x104] ss:$16 sps:$4 sm:$0xff]  }
   0xc   :  { %523 = vmatprep.subr.bf16.mxu0 %v1212_v12  ;;  %636 = vmatprep.subr.bf16.mxu1 %v1214_v13  ;;  %v1244_v33 = vld [vmem:[%s1689_s1 + $0x10c] ss:$16 sps:$4 sm:$0xff]   ;;  %v1246_v34 = vld [vmem:[%s1689_s1 + $0x100] ss:$16 sps:$4 sm:$0xff]   ;;  %v1247_v35 = vld [vmem:[%s1689_s1 + $0x108] ss:$16 sps:$4 sm:$0xff]  }
   0xd   :  { %v1248_v36 = vld [vmem:[%s1689_s1 + $0x124] ss:$16 sps:$4 sm:$0xff]   ;;  %v1250_v37 = vld [vmem:[%s1689_s1 + $0x12c] ss:$16 sps:$4 sm:$0xff]   ;;  %v1252_v38 = vld [vmem:[%s1689_s1 + $0x120] ss:$16 sps:$4 sm:$0xff]  }
   0xe   :  { %v1253_v39 = vld [vmem:[%s1689_s1 + $0x128] ss:$16 sps:$4 sm:$0xff]   ;;  %v1254_v40 = vld [vmem:[%s1689_s1 + $0x144] ss:$16 sps:$4 sm:$0xff]   ;;  %v1256_v41 = vld [vmem:[%s1689_s1 + $0x14c] ss:$16 sps:$4 sm:$0xff]  }
   0xf   :  { %524 = vmatpush1.bf16.msra.mxu0 %v1216_v14  ;;  %637 = vmatpush1.bf16.msra.mxu1 %v1217_v15  ;;  %v1258_v42 = vld [vmem:[%s1689_s1 + $0x140] ss:$16 sps:$4 sm:$0xff]   ;;  %v1259_v43 = vld [vmem:[%s1689_s1 + $0x148] ss:$16 sps:$4 sm:$0xff]   ;;  %v1260_v44 = vld [vmem:[%s1689_s1 + $0x164] ss:$16 sps:$4 sm:$0xff]  }
  0x10   :  { %525 = vmatprep.subr.bf16.mxu0 %v1218_v16  ;;  %638 = vmatprep.subr.bf16.mxu1 %v1220_v17  ;;  %v1262_v45 = vld [vmem:[%s1689_s1 + $0x16c] ss:$16 sps:$4 sm:$0xff]   ;;  %v1264_v46 = vld [vmem:[%s1689_s1 + $0x160] ss:$16 sps:$4 sm:$0xff]   ;;  %v1265_v47 = vld [vmem:[%s1689_s1 + $0x168] ss:$16 sps:$4 sm:$0xff]  }
  0x11   :  { %v1292_v48 = vld [vmem:[%s1688_s0 + $0x4] ss:$8 sps:$4 sm:$0xff]   ;;  %v1270_v51 = vld [vmem:[%s1689_s1 + $0x180] ss:$16 sps:$4 sm:$0xff]   ;;  %v1271_v52 = vld [vmem:[%s1689_s1 + $0x188] ss:$16 sps:$4 sm:$0xff]  }
  0x12   :  { %v1266_v49 = vld [vmem:[%s1689_s1 + $0x184] ss:$16 sps:$4 sm:$0xff]   ;;  %v1268_v50 = vld [vmem:[%s1689_s1 + $0x18c] ss:$16 sps:$4 sm:$0xff]   ;;  %549 = vmatprep.mubr.bf16.mxu0 %v1292_v48  ;;  %662 = vmatprep.mubr.bf16.mxu1 %v1292_v48  ;;  %v1276_v55 = vld [vmem:[%s1689_s1 + $0x1a0] ss:$16 sps:$4 sm:$0xff]  }
  0x13   :  { %526 = vmatpush1.bf16.msra.mxu0 %v1222_v18  ;;  %639 = vmatpush1.bf16.msra.mxu1 %v1223_v19  ;;  %v1272_v53 = vld [vmem:[%s1689_s1 + $0x1a4] ss:$16 sps:$4 sm:$0xff]   ;;  %v1274_v54 = vld [vmem:[%s1689_s1 + $0x1ac] ss:$16 sps:$4 sm:$0xff]   ;;  %v1277_v56 = vld [vmem:[%s1689_s1 + $0x1a8] ss:$16 sps:$4 sm:$0xff]  }
  0x14   :  { %527 = vmatprep.subr.bf16.mxu0 %v1224_v20  ;;  %640 = vmatprep.subr.bf16.mxu1 %v1226_v21  ;;  %v1278_v57 = vld [vmem:[%s1689_s1 + $0x1c4] ss:$16 sps:$4 sm:$0xff]   ;;  %v1280_v58 = vld [vmem:[%s1689_s1 + $0x1cc] ss:$16 sps:$4 sm:$0xff]  }
  0x17   :  { %528 = vmatpush1.bf16.msra.mxu0 %v1228_v22  ;;  %641 = vmatpush1.bf16.msra.mxu1 %v1229_v23 }
  0x18   :  { %529 = vmatprep.subr.bf16.mxu0 %v1230_v24  ;;  %642 = vmatprep.subr.bf16.mxu1 %v1232_v25 }
  0x1b   :  { %530 = vmatpush1.bf16.msra.mxu0 %v1234_v26  ;;  %643 = vmatpush1.bf16.msra.mxu1 %v1235_v27 }
  0x1c   :  { %531 = vmatprep.subr.bf16.mxu0 %v1236_v28  ;;  %644 = vmatprep.subr.bf16.mxu1 %v1238_v29 }
  0x1f   :  { %532 = vmatpush1.bf16.msra.mxu0 %v1240_v30  ;;  %645 = vmatpush1.bf16.msra.mxu1 %v1241_v31 }
  0x20   :  { %533 = vmatprep.subr.bf16.mxu0 %v1242_v32  ;;  %646 = vmatprep.subr.bf16.mxu1 %v1244_v33 }
  0x23   :  { %534 = vmatpush1.bf16.msra.mxu0 %v1246_v34  ;;  %647 = vmatpush1.bf16.msra.mxu1 %v1247_v35 }
  0x24   :  { %535 = vmatprep.subr.bf16.mxu0 %v1248_v36  ;;  %648 = vmatprep.subr.bf16.mxu1 %v1250_v37 }
  0x27   :  { %536 = vmatpush1.bf16.msra.mxu0 %v1252_v38  ;;  %649 = vmatpush1.bf16.msra.mxu1 %v1253_v39 }
  0x28   :  { %537 = vmatprep.subr.bf16.mxu0 %v1254_v40  ;;  %650 = vmatprep.subr.bf16.mxu1 %v1256_v41 }
  0x2b   :  { %538 = vmatpush1.bf16.msra.mxu0 %v1258_v42  ;;  %651 = vmatpush1.bf16.msra.mxu1 %v1259_v43 }
  0x2c   :  { %539 = vmatprep.subr.bf16.mxu0 %v1260_v44  ;;  %652 = vmatprep.subr.bf16.mxu1 %v1262_v45 }
  0x2f   :  { %540 = vmatpush1.bf16.msra.mxu0 %v1264_v46  ;;  %653 = vmatpush1.bf16.msra.mxu1 %v1265_v47 }
  0x30   :  { %541 = vmatprep.subr.bf16.mxu0 %v1266_v49  ;;  %654 = vmatprep.subr.bf16.mxu1 %v1268_v50 }
  0x33   :  { %542 = vmatpush1.bf16.msra.mxu0 %v1270_v51  ;;  %655 = vmatpush1.bf16.msra.mxu1 %v1271_v52 }
  0x34   :  { %543 = vmatprep.subr.bf16.mxu0 %v1272_v53  ;;  %656 = vmatprep.subr.bf16.mxu1 %v1274_v54 }
  0x35   :  { %8 = vsyncpa [#allocation3], 0  ;;  %v1282_v59 = vld [vmem:[%s1689_s1 + $0x1c0] ss:$16 sps:$4 sm:$0xff]   ;;  %v1283_v60 = vld [vmem:[%s1689_s1 + $0x1c8] ss:$16 sps:$4 sm:$0xff]   ;;  %v97_v16 = vlaneseq }
  0x36   :  { %v1284_v61 = vld [vmem:[%s1689_s1 + $0x1e4] ss:$16 sps:$4 sm:$0xff]   ;;  %v1286_v62 = vld [vmem:[%s1689_s1 + $0x1ec] ss:$16 sps:$4 sm:$0xff]   ;;  %v1288_v63 = vld [vmem:[%s1689_s1 + $0x1e0] ss:$16 sps:$4 sm:$0xff]  }
  0x37   :  { %544 = vmatpush1.bf16.msra.mxu0 %v1276_v55  ;;  %657 = vmatpush1.bf16.msra.mxu1 %v1277_v56  ;;  %v1289_v0 = vld [vmem:[%s1689_s1 + $0x1e8] ss:$16 sps:$4 sm:$0xff]   ;;  %v1293_v2 = vld [vmem:[%s1688_s0 + $0x14] ss:$8 sps:$4 sm:$0xff]   ;;  %v1296_v4 = vld [vmem:[%s1688_s0 + $0x24] ss:$8 sps:$4 sm:$0xff]  }
  0x38   :  { %545 = vmatprep.subr.bf16.mxu0 %v1278_v57  ;;  %658 = vmatprep.subr.bf16.mxu1 %v1280_v58  ;;  %v1290_v1 = vld [vmem:[%s1688_s0] ss:$8 sps:$4 sm:$0xff]   ;;  %v1295_v3 = vld [vmem:[%s1688_s0 + $0x10] ss:$8 sps:$4 sm:$0xff]   ;;  %v1299_v6 = vld [vmem:[%s1688_s0 + $0x34] ss:$8 sps:$4 sm:$0xff]  }
  0x39   :  { %v1298_v5 = vld [vmem:[%s1688_s0 + $0x20] ss:$8 sps:$4 sm:$0xff]   ;;  %v1301_v7 = vld [vmem:[%s1688_s0 + $0x30] ss:$8 sps:$4 sm:$0xff]   ;;  %v1302_v8 = vld [vmem:[%s1688_s0 + $0x44] ss:$8 sps:$4 sm:$0xff]  }
  0x3a   :  { %v1304_v9 = vld [vmem:[%s1688_s0 + $0x40] ss:$8 sps:$4 sm:$0xff]   ;;  %v1305_v10 = vld [vmem:[%s1688_s0 + $0x54] ss:$8 sps:$4 sm:$0xff]   ;;  %v1307_v11 = vld [vmem:[%s1688_s0 + $0x50] ss:$8 sps:$4 sm:$0xff]  }
  0x3b   :  { %546 = vmatpush1.bf16.msra.mxu0 %v1282_v59  ;;  %659 = vmatpush1.bf16.msra.mxu1 %v1283_v60  ;;  %v1308_v12 = vld [vmem:[%s1688_s0 + $0x64] ss:$8 sps:$4 sm:$0xff]   ;;  %v1310_v13 = vld [vmem:[%s1688_s0 + $0x60] ss:$8 sps:$4 sm:$0xff]   ;;  %v1311_v14 = vld [vmem:[%s1688_s0 + $0x74] ss:$8 sps:$4 sm:$0xff]  }
  0x3c   :  { %547 = vmatprep.subr.bf16.mxu0 %v1284_v61  ;;  %660 = vmatprep.subr.bf16.mxu1 %v1286_v62  ;;  %v1313_v15 = vld [vmem:[%s1688_s0 + $0x70] ss:$8 sps:$4 sm:$0xff]   ;;  %v98_v17 = vshrl.u32 %v97_v16, 7  ;;  %v95_v20 = vld [vmem:[%s1690_s2] sm:$0xf]  ;;  %s1338_s0 = smov [#allocation2]  }
  0x3d   :  { %s1036_s2 = sshll.u32 %s1338_s0, 4  ;;  %s1037_s2 = int_to_ptr.vmem [resolvable:$true] %s1036_s2 }
  0x3e   :  { %v99_v18 = vsub.s32 0, %v98_v17  ;;  %v107_v19 = vsub.s32 2, %v98_v17  ;;  %v103_v21 = vsub.s32 1, %v98_v17  ;;  %v111_v22 = vsub.s32 3, %v98_v17  ;;  %s1314_s11 = scalar_lea.vmem %s1037_s2, 4096  ;;  %p1319_p1 = scmp.lt.s32.totalorder %s1037_s2, %s1037_s2 }
  0x3f   :  { %548 = vmatpush1.bf16.msra.mxu0 %v1288_v63  ;;  %661 = vmatpush1.bf16.msra.mxu1 %v1289_v0  ;;  %p1315_p0 = scmp.ne.s32.totalorder %s1037_s2, %s1314_s11  ;;  %p1320_p2 = scmp.lt.s32.totalorder %s1314_s11, %s1314_s11 }
  0x40   :  { %v1604_v23 = vrot.slane %v95_v20, %v99_v18  ;;  %v1606_v24 = vrot.slane %v95_v20, %v107_v19  ;;  %v1608_v25 = vrot.slane %v95_v20, %v103_v21  ;;  %v1610_v26 = vrot.slane %v95_v20, %v111_v22 }
  0x41   :  { %p1321_p3 = por %p1320_p2, %p1319_p1 }
  0x42   :  { %550 = vmatmul.mubr.bf16.vlgmr.msra.gmra.mrb[0].mxu0 %v1290_v1  ;;  %663 = vmatmul.mubr.bf16.vlgmr.msra.gmra.mrb[0].mxu1 %v1290_v1 }
  0x43   :  { %559 = vmatprep.mubr.bf16.mxu0 %v1293_v2  ;;  %672 = vmatprep.mubr.bf16.mxu1 %v1293_v2  ;;  %p1322_p4 = pnand %p1321_p3, %p1315_p0 }
  0x4a   :  { %560 = vmatmul.mubr.bf16.gmra.mrb[4].mxu0 %v1295_v3  ;;  %673 = vmatmul.mubr.bf16.gmra.mrb[4].mxu1 %v1295_v3 }
  0x4b   :  { %569 = vmatprep.mubr.bf16.mxu0 %v1296_v4  ;;  %682 = vmatprep.mubr.bf16.mxu1 %v1296_v4 }
  0x52   :  { %570 = vmatmul.mubr.bf16.gmra.mrb[8].mxu0 %v1298_v5  ;;  %683 = vmatmul.mubr.bf16.gmra.mrb[8].mxu1 %v1298_v5 }
  0x53   :  { %579 = vmatprep.mubr.bf16.mxu0 %v1299_v6  ;;  %692 = vmatprep.mubr.bf16.mxu1 %v1299_v6 }
  0x5a   :  { %580 = vmatmul.mubr.bf16.gmra.mrb[12].mxu0 %v1301_v7  ;;  %693 = vmatmul.mubr.bf16.gmra.mrb[12].mxu1 %v1301_v7 }
  0x5b   :  { %589 = vmatprep.mubr.bf16.mxu0 %v1302_v8  ;;  %702 = vmatprep.mubr.bf16.mxu1 %v1302_v8 }
  0x62   :  { %590 = vmatmul.mubr.bf16.gmra.mrb[16].mxu0 %v1304_v9  ;;  %703 = vmatmul.mubr.bf16.gmra.mrb[16].mxu1 %v1304_v9 }
  0x63   :  { %599 = vmatprep.mubr.bf16.mxu0 %v1305_v10  ;;  %712 = vmatprep.mubr.bf16.mxu1 %v1305_v10 }
  0x6a   :  { %600 = vmatmul.mubr.bf16.gmra.mrb[20].mxu0 %v1307_v11  ;;  %713 = vmatmul.mubr.bf16.gmra.mrb[20].mxu1 %v1307_v11 }
  0x6b   :  { %609 = vmatprep.mubr.bf16.mxu0 %v1308_v12  ;;  %722 = vmatprep.mubr.bf16.mxu1 %v1308_v12 }
  0x72   :  { %610 = vmatmul.mubr.bf16.gmra.mrb[24].mxu0 %v1310_v13  ;;  %723 = vmatmul.mubr.bf16.gmra.mrb[24].mxu1 %v1310_v13 }
  0x73   :  { %619 = vmatprep.mubr.bf16.mxu0 %v1311_v14  ;;  %732 = vmatprep.mubr.bf16.mxu1 %v1311_v14 }
  0x7a   :  { %620 = vmatmul.mubr.bf16.gmra.mrb[28].mxu0 %v1313_v15  ;;  %733 = vmatmul.mubr.bf16.gmra.mrb[28].mxu1 %v1313_v15 }
 0x115   :  { %v551_v27 = vpop.f32.mrb[0].mxu0  ;;  %v664_v28 = vpop.f32.mrb[0].mxu1 }
 0x116   :  { %v552_v29 = vadd.f32 %v551_v27, %v1604_v23  ;;  %v665_v30 = vadd.f32 %v664_v28, %v1606_v24  ;;  %v553_v31 = vpop.f32.mrb[1].mxu0  ;;  %v666_v32 = vpop.f32.mrb[1].mxu1 }
 0x117   :  { %v554_v33 = vadd.f32 %v553_v31, %v1608_v25  ;;  %v667_v34 = vadd.f32 %v666_v32, %v1610_v26  ;;  %v555_v35 = vpop.f32.mrb[2].mxu0  ;;  %v668_v36 = vpop.f32.mrb[2].mxu1 }
 0x118   :  { %v743_v37 = vmax.f32 %v552_v29, 0.0  ;;  %v745_v38 = vmax.f32 %v665_v30, 0.0  ;;  %v556_v39 = vadd.f32 %v555_v35, %v1604_v23  ;;  %v669_v40 = vadd.f32 %v668_v36, %v1606_v24  ;;  %v557_v41 = vpop.f32.mrb[3].mxu0  ;;  %v670_v42 = vpop.f32.mrb[3].mxu1 }
 0x119   :  { %v744_v43 = vmax.f32 %v554_v33, 0.0  ;;  %v746_v44 = vmax.f32 %v667_v34, 0.0  ;;  %v558_v45 = vadd.f32 %v557_v41, %v1608_v25  ;;  %v671_v46 = vadd.f32 %v670_v42, %v1610_v26 }
 0x11a   :  { %v747_v47 = vmax.f32 %v556_v39, 0.0  ;;  %v749_v48 = vmax.f32 %v669_v40, 0.0 }
 0x11b   :  { %v1159_v49 = vpack.c.bf16 %v744_v43, %v743_v37  ;;  %v1160_v50 = vpack.c.bf16 %v746_v44, %v745_v38  ;;  %v748_v51 = vmax.f32 %v558_v45, 0.0  ;;  %v750_v52 = vmax.f32 %v671_v46, 0.0 }
 0x11d   :  { %999 = vst [vmem:[#allocation2] sm:$0xff] %v1159_v49  ;;  %1000 = vst [vmem:[#allocation2 + $0x8] sm:$0xff] %v1160_v50  ;;  %v1161_v53 = vpack.c.bf16 %v748_v51, %v747_v47  ;;  %v1162_v54 = vpack.c.bf16 %v750_v52, %v749_v48  ;;  %v561_v55 = vpop.f32.mrb[4].mxu0  ;;  %v674_v56 = vpop.f32.mrb[4].mxu1 }
 0x11e   :  { %v562_v57 = vadd.f32 %v561_v55, %v1604_v23  ;;  %v675_v58 = vadd.f32 %v674_v56, %v1606_v24  ;;  %v563_v59 = vpop.f32.mrb[5].mxu0  ;;  %v676_v60 = vpop.f32.mrb[5].mxu1 }
 0x11f   :  { %1001 = vst [vmem:[#allocation2 + $0x10] sm:$0xff] %v1161_v53  ;;  %1002 = vst [vmem:[#allocation2 + $0x18] sm:$0xff] %v1162_v54  ;;  %v564_v61 = vadd.f32 %v563_v59, %v1608_v25  ;;  %v677_v62 = vadd.f32 %v676_v60, %v1610_v26  ;;  %v565_v63 = vpop.f32.mrb[6].mxu0  ;;  %v678_v0 = vpop.f32.mrb[6].mxu1 }
 0x120   :  { %v751_v1 = vmax.f32 %v562_v57, 0.0  ;;  %v753_v2 = vmax.f32 %v675_v58, 0.0  ;;  %v566_v3 = vadd.f32 %v565_v63, %v1604_v23  ;;  %v679_v4 = vadd.f32 %v678_v0, %v1606_v24  ;;  %v567_v5 = vpop.f32.mrb[7].mxu0  ;;  %v680_v6 = vpop.f32.mrb[7].mxu1 }
 0x121   :  { %v752_v7 = vmax.f32 %v564_v61, 0.0  ;;  %v754_v8 = vmax.f32 %v677_v62, 0.0  ;;  %v568_v9 = vadd.f32 %v567_v5, %v1608_v25  ;;  %v681_v10 = vadd.f32 %v680_v6, %v1610_v26 }
 0x122   :  { %v755_v11 = vmax.f32 %v566_v3, 0.0  ;;  %v757_v12 = vmax.f32 %v679_v4, 0.0 }
 0x123   :  { %v1163_v13 = vpack.c.bf16 %v752_v7, %v751_v1  ;;  %v1164_v14 = vpack.c.bf16 %v754_v8, %v753_v2  ;;  %v756_v15 = vmax.f32 %v568_v9, 0.0  ;;  %v758_v16 = vmax.f32 %v681_v10, 0.0 }
 0x125   :  { %1003 = vst [vmem:[#allocation2 + $0x20] sm:$0xff] %v1163_v13  ;;  %1004 = vst [vmem:[#allocation2 + $0x28] sm:$0xff] %v1164_v14  ;;  %v1165_v17 = vpack.c.bf16 %v756_v15, %v755_v11  ;;  %v1166_v18 = vpack.c.bf16 %v758_v16, %v757_v12  ;;  %v571_v19 = vpop.f32.mrb[8].mxu0  ;;  %v684_v20 = vpop.f32.mrb[8].mxu1 }
 0x126   :  { %v572_v21 = vadd.f32 %v571_v19, %v1604_v23  ;;  %v685_v22 = vadd.f32 %v684_v20, %v1606_v24  ;;  %v573_v27 = vpop.f32.mrb[9].mxu0  ;;  %v686_v28 = vpop.f32.mrb[9].mxu1 }
 0x127   :  { %1005 = vst [vmem:[#allocation2 + $0x30] sm:$0xff] %v1165_v17  ;;  %1006 = vst [vmem:[#allocation2 + $0x38] sm:$0xff] %v1166_v18  ;;  %v574_v29 = vadd.f32 %v573_v27, %v1608_v25  ;;  %v687_v30 = vadd.f32 %v686_v28, %v1610_v26  ;;  %v575_v31 = vpop.f32.mrb[10].mxu0  ;;  %v688_v32 = vpop.f32.mrb[10].mxu1 }
 0x128   :  { %v759_v33 = vmax.f32 %v572_v21, 0.0  ;;  %v761_v34 = vmax.f32 %v685_v22, 0.0  ;;  %v576_v35 = vadd.f32 %v575_v31, %v1604_v23  ;;  %v689_v36 = vadd.f32 %v688_v32, %v1606_v24  ;;  %v577_v37 = vpop.f32.mrb[11].mxu0  ;;  %v690_v38 = vpop.f32.mrb[11].mxu1 }
 0x129   :  { %v760_v39 = vmax.f32 %v574_v29, 0.0  ;;  %v762_v40 = vmax.f32 %v687_v30, 0.0  ;;  %v578_v41 = vadd.f32 %v577_v37, %v1608_v25  ;;  %v691_v42 = vadd.f32 %v690_v38, %v1610_v26 }
 0x12a   :  { %v763_v43 = vmax.f32 %v576_v35, 0.0  ;;  %v765_v44 = vmax.f32 %v689_v36, 0.0 }
 0x12b   :  { %v1167_v45 = vpack.c.bf16 %v760_v39, %v759_v33  ;;  %v1168_v46 = vpack.c.bf16 %v762_v40, %v761_v34  ;;  %v764_v47 = vmax.f32 %v578_v41, 0.0  ;;  %v766_v48 = vmax.f32 %v691_v42, 0.0 }
 0x12d   :  { %1007 = vst [vmem:[#allocation2 + $0x40] sm:$0xff] %v1167_v45  ;;  %1008 = vst [vmem:[#allocation2 + $0x48] sm:$0xff] %v1168_v46  ;;  %v1169_v49 = vpack.c.bf16 %v764_v47, %v763_v43  ;;  %v1170_v50 = vpack.c.bf16 %v766_v48, %v765_v44  ;;  %v581_v51 = vpop.f32.mrb[12].mxu0  ;;  %v694_v52 = vpop.f32.mrb[12].mxu1 }
 0x12e   :  { %v582_v53 = vadd.f32 %v581_v51, %v1604_v23  ;;  %v695_v54 = vadd.f32 %v694_v52, %v1606_v24  ;;  %v583_v55 = vpop.f32.mrb[13].mxu0  ;;  %v696_v56 = vpop.f32.mrb[13].mxu1 }
 0x12f   :  { %1009 = vst [vmem:[#allocation2 + $0x50] sm:$0xff] %v1169_v49  ;;  %1010 = vst [vmem:[#allocation2 + $0x58] sm:$0xff] %v1170_v50  ;;  %v584_v57 = vadd.f32 %v583_v55, %v1608_v25  ;;  %v697_v58 = vadd.f32 %v696_v56, %v1610_v26  ;;  %v585_v59 = vpop.f32.mrb[14].mxu0  ;;  %v698_v60 = vpop.f32.mrb[14].mxu1 }
 0x130   :  { %v767_v61 = vmax.f32 %v582_v53, 0.0  ;;  %v769_v62 = vmax.f32 %v695_v54, 0.0  ;;  %v586_v63 = vadd.f32 %v585_v59, %v1604_v23  ;;  %v699_v0 = vadd.f32 %v698_v60, %v1606_v24  ;;  %v587_v1 = vpop.f32.mrb[15].mxu0  ;;  %v700_v2 = vpop.f32.mrb[15].mxu1 }
 0x131   :  { %v768_v3 = vmax.f32 %v584_v57, 0.0  ;;  %v770_v4 = vmax.f32 %v697_v58, 0.0  ;;  %v588_v5 = vadd.f32 %v587_v1, %v1608_v25  ;;  %v701_v6 = vadd.f32 %v700_v2, %v1610_v26 }
 0x132   :  { %v771_v7 = vmax.f32 %v586_v63, 0.0  ;;  %v773_v8 = vmax.f32 %v699_v0, 0.0 }
 0x133   :  { %v1171_v9 = vpack.c.bf16 %v768_v3, %v767_v61  ;;  %v1172_v10 = vpack.c.bf16 %v770_v4, %v769_v62  ;;  %v772_v11 = vmax.f32 %v588_v5, 0.0  ;;  %v774_v12 = vmax.f32 %v701_v6, 0.0 }
 0x135   :  { %1011 = vst [vmem:[#allocation2 + $0x60] sm:$0xff] %v1171_v9  ;;  %1012 = vst [vmem:[#allocation2 + $0x68] sm:$0xff] %v1172_v10  ;;  %v1173_v13 = vpack.c.bf16 %v772_v11, %v771_v7  ;;  %v1174_v14 = vpack.c.bf16 %v774_v12, %v773_v8  ;;  %v591_v15 = vpop.f32.mrb[16].mxu0  ;;  %v704_v16 = vpop.f32.mrb[16].mxu1 }
 0x136   :  { %v592_v17 = vadd.f32 %v591_v15, %v1604_v23  ;;  %v705_v18 = vadd.f32 %v704_v16, %v1606_v24  ;;  %v593_v19 = vpop.f32.mrb[17].mxu0  ;;  %v706_v20 = vpop.f32.mrb[17].mxu1 }
 0x137   :  { %1013 = vst [vmem:[#allocation2 + $0x70] sm:$0xff] %v1173_v13  ;;  %1014 = vst [vmem:[#allocation2 + $0x78] sm:$0xff] %v1174_v14  ;;  %v594_v21 = vadd.f32 %v593_v19, %v1608_v25  ;;  %v707_v22 = vadd.f32 %v706_v20, %v1610_v26  ;;  %v595_v27 = vpop.f32.mrb[18].mxu0  ;;  %v708_v28 = vpop.f32.mrb[18].mxu1 }
 0x138   :  { %v775_v29 = vmax.f32 %v592_v17, 0.0  ;;  %v777_v30 = vmax.f32 %v705_v18, 0.0  ;;  %v596_v31 = vadd.f32 %v595_v27, %v1604_v23  ;;  %v709_v32 = vadd.f32 %v708_v28, %v1606_v24  ;;  %v597_v33 = vpop.f32.mrb[19].mxu0  ;;  %v710_v34 = vpop.f32.mrb[19].mxu1 }
 0x139   :  { %v776_v35 = vmax.f32 %v594_v21, 0.0  ;;  %v778_v36 = vmax.f32 %v707_v22, 0.0  ;;  %v598_v37 = vadd.f32 %v597_v33, %v1608_v25  ;;  %v711_v38 = vadd.f32 %v710_v34, %v1610_v26 }
 0x13a   :  { %v779_v39 = vmax.f32 %v596_v31, 0.0  ;;  %v781_v40 = vmax.f32 %v709_v32, 0.0 }
 0x13b   :  { %v1175_v41 = vpack.c.bf16 %v776_v35, %v775_v29  ;;  %v1176_v42 = vpack.c.bf16 %v778_v36, %v777_v30  ;;  %v780_v43 = vmax.f32 %v598_v37, 0.0  ;;  %v782_v44 = vmax.f32 %v711_v38, 0.0 }
 0x13d   :  { %1015 = vst [vmem:[#allocation2 + $0x80] sm:$0xff] %v1175_v41  ;;  %1016 = vst [vmem:[#allocation2 + $0x88] sm:$0xff] %v1176_v42  ;;  %v1177_v45 = vpack.c.bf16 %v780_v43, %v779_v39  ;;  %v1178_v46 = vpack.c.bf16 %v782_v44, %v781_v40  ;;  %v601_v47 = vpop.f32.mrb[20].mxu0  ;;  %v714_v48 = vpop.f32.mrb[20].mxu1 }
 0x13e   :  { %v602_v49 = vadd.f32 %v601_v47, %v1604_v23  ;;  %v715_v50 = vadd.f32 %v714_v48, %v1606_v24  ;;  %v603_v51 = vpop.f32.mrb[21].mxu0  ;;  %v716_v52 = vpop.f32.mrb[21].mxu1 }
 0x13f   :  { %1017 = vst [vmem:[#allocation2 + $0x90] sm:$0xff] %v1177_v45  ;;  %1018 = vst [vmem:[#allocation2 + $0x98] sm:$0xff] %v1178_v46  ;;  %v604_v53 = vadd.f32 %v603_v51, %v1608_v25  ;;  %v717_v54 = vadd.f32 %v716_v52, %v1610_v26  ;;  %v605_v55 = vpop.f32.mrb[22].mxu0  ;;  %v718_v56 = vpop.f32.mrb[22].mxu1 }
 0x140   :  { %v783_v57 = vmax.f32 %v602_v49, 0.0  ;;  %v785_v58 = vmax.f32 %v715_v50, 0.0  ;;  %v606_v59 = vadd.f32 %v605_v55, %v1604_v23  ;;  %v719_v60 = vadd.f32 %v718_v56, %v1606_v24  ;;  %v607_v61 = vpop.f32.mrb[23].mxu0  ;;  %v720_v62 = vpop.f32.mrb[23].mxu1 }
 0x141   :  { %v784_v63 = vmax.f32 %v604_v53, 0.0  ;;  %v786_v0 = vmax.f32 %v717_v54, 0.0  ;;  %v608_v1 = vadd.f32 %v607_v61, %v1608_v25  ;;  %v721_v2 = vadd.f32 %v720_v62, %v1610_v26 }
 0x142   :  { %v787_v3 = vmax.f32 %v606_v59, 0.0  ;;  %v789_v4 = vmax.f32 %v719_v60, 0.0 }
 0x143   :  { %v1179_v5 = vpack.c.bf16 %v784_v63, %v783_v57  ;;  %v1180_v6 = vpack.c.bf16 %v786_v0, %v785_v58  ;;  %v788_v7 = vmax.f32 %v608_v1, 0.0  ;;  %v790_v8 = vmax.f32 %v721_v2, 0.0 }
 0x145   :  { %1019 = vst [vmem:[#allocation2 + $0xa0] sm:$0xff] %v1179_v5  ;;  %1020 = vst [vmem:[#allocation2 + $0xa8] sm:$0xff] %v1180_v6  ;;  %v1181_v9 = vpack.c.bf16 %v788_v7, %v787_v3  ;;  %v1182_v10 = vpack.c.bf16 %v790_v8, %v789_v4  ;;  %v611_v11 = vpop.f32.mrb[24].mxu0  ;;  %v724_v12 = vpop.f32.mrb[24].mxu1 }
 0x146   :  { %v612_v13 = vadd.f32 %v611_v11, %v1604_v23  ;;  %v725_v14 = vadd.f32 %v724_v12, %v1606_v24  ;;  %v613_v15 = vpop.f32.mrb[25].mxu0  ;;  %v726_v16 = vpop.f32.mrb[25].mxu1 }
 0x147   :  { %1021 = vst [vmem:[#allocation2 + $0xb0] sm:$0xff] %v1181_v9  ;;  %1022 = vst [vmem:[#allocation2 + $0xb8] sm:$0xff] %v1182_v10  ;;  %v614_v17 = vadd.f32 %v613_v15, %v1608_v25  ;;  %v727_v18 = vadd.f32 %v726_v16, %v1610_v26  ;;  %v615_v19 = vpop.f32.mrb[26].mxu0  ;;  %v728_v20 = vpop.f32.mrb[26].mxu1 }
 0x148   :  { %v791_v21 = vmax.f32 %v612_v13, 0.0  ;;  %v793_v22 = vmax.f32 %v725_v14, 0.0  ;;  %v616_v27 = vadd.f32 %v615_v19, %v1604_v23  ;;  %v729_v28 = vadd.f32 %v728_v20, %v1606_v24  ;;  %v617_v29 = vpop.f32.mrb[27].mxu0  ;;  %v730_v30 = vpop.f32.mrb[27].mxu1 }
 0x149   :  { %v792_v31 = vmax.f32 %v614_v17, 0.0  ;;  %v794_v32 = vmax.f32 %v727_v18, 0.0  ;;  %v618_v33 = vadd.f32 %v617_v29, %v1608_v25  ;;  %v731_v34 = vadd.f32 %v730_v30, %v1610_v26 }
 0x14a   :  { %v795_v35 = vmax.f32 %v616_v27, 0.0  ;;  %v797_v36 = vmax.f32 %v729_v28, 0.0 }
 0x14b   :  { %v1183_v37 = vpack.c.bf16 %v792_v31, %v791_v21  ;;  %v1184_v38 = vpack.c.bf16 %v794_v32, %v793_v22  ;;  %v796_v39 = vmax.f32 %v618_v33, 0.0  ;;  %v798_v40 = vmax.f32 %v731_v34, 0.0 }
 0x14d   :  { %1023 = vst [vmem:[#allocation2 + $0xc0] sm:$0xff] %v1183_v37  ;;  %1024 = vst [vmem:[#allocation2 + $0xc8] sm:$0xff] %v1184_v38  ;;  %v1185_v41 = vpack.c.bf16 %v796_v39, %v795_v35  ;;  %v1186_v42 = vpack.c.bf16 %v798_v40, %v797_v36  ;;  %v621_v43 = vpop.f32.mrb[28].mxu0  ;;  %v734_v44 = vpop.f32.mrb[28].mxu1 }
 0x14e   :  { %v622_v45 = vadd.f32 %v621_v43, %v1604_v23  ;;  %v735_v46 = vadd.f32 %v734_v44, %v1606_v24  ;;  %v623_v47 = vpop.f32.mrb[29].mxu0  ;;  %v736_v48 = vpop.f32.mrb[29].mxu1 }
 0x14f   :  { %1025 = vst [vmem:[#allocation2 + $0xd0] sm:$0xff] %v1185_v41  ;;  %1026 = vst [vmem:[#allocation2 + $0xd8] sm:$0xff] %v1186_v42  ;;  %v624_v49 = vadd.f32 %v623_v47, %v1608_v25  ;;  %v737_v50 = vadd.f32 %v736_v48, %v1610_v26  ;;  %v625_v51 = vpop.f32.mrb[30].mxu0  ;;  %v738_v52 = vpop.f32.mrb[30].mxu1 }
 0x150   :  { %v799_v53 = vmax.f32 %v622_v45, 0.0  ;;  %v801_v54 = vmax.f32 %v735_v46, 0.0  ;;  %v626_v55 = vadd.f32 %v625_v51, %v1604_v23  ;;  %v739_v56 = vadd.f32 %v738_v52, %v1606_v24  ;;  %v627_v57 = vpop.f32.mrb[31].mxu0  ;;  %v740_v58 = vpop.f32.mrb[31].mxu1 }
 0x151   :  { %v800_v59 = vmax.f32 %v624_v49, 0.0  ;;  %v802_v60 = vmax.f32 %v737_v50, 0.0  ;;  %v628_v61 = vadd.f32 %v627_v57, %v1608_v25  ;;  %v741_v62 = vadd.f32 %v740_v58, %v1610_v26 }
 0x152   :  { %v803_v63 = vmax.f32 %v626_v55, 0.0  ;;  %v805_v0 = vmax.f32 %v739_v56, 0.0 }
 0x153   :  { %v1187_v1 = vpack.c.bf16 %v800_v59, %v799_v53  ;;  %v1188_v2 = vpack.c.bf16 %v802_v60, %v801_v54  ;;  %v804_v3 = vmax.f32 %v628_v61, 0.0  ;;  %v806_v4 = vmax.f32 %v741_v62, 0.0 }
 0x155   :  { %1027 = vst [vmem:[#allocation2 + $0xe0] sm:$0xff] %v1187_v1  ;;  %1028 = vst [vmem:[#allocation2 + $0xe8] sm:$0xff] %v1188_v2  ;;  %v1189_v23 = vpack.c.bf16 %v804_v3, %v803_v63  ;;  %v1190_v24 = vpack.c.bf16 %v806_v4, %v805_v0 }
 0x157   :  { %1029 = vst [vmem:[#allocation2 + $0xf0] sm:$0xff] %v1189_v23  ;;  %1030 = vst [vmem:[#allocation2 + $0xf8] sm:$0xff] %v1190_v24 }
 0x158   :  { %1325 = shalt.err (!%p1322_p4)
}
 0x159   :  { %s1326_s13 = scalar_lea.hbm %s1691_s3, 4096 }
 0x15a   :  { %p1327_p5 = scmp.ne.s32.totalorder %s1691_s3, %s1326_s13  ;;  %p1330_p6 = scmp.lt.u32.totalorder %s1326_s13, %s1691_s3 }
 0x15c   :  { %p1332_p7 = pnand %p1330_p6, %p1327_p5 }
 0x15e   :  { %1335 = shalt.err (!%p1332_p7)
}
 0x15f   :  { %s1339_s18 = smov 256   ;;  %s1340_s19 = smov 16  }
 0x160   :  { %1042 = dma.vmem_to_hbm [thread:$0]  %s1037_s2, 4096, %s1691_s3, [#allocation3], %s1339_s18, %s1339_s18, %s1340_s19  }
 0x161   :  { %1336 = dma.done.wait [#allocation3], 4096  }
 0x162   :  { %1337 = vsyncadd [#allocation3], 4294963200 }
 0x163   :  { %1046 = vsyncpa [#allocation3], 1 }

</bundles_post_ra>
